<compile_context>
chip_gen: v7x
topology: tpu7x:2x2x1
jax: 0.10.0
libtpu: 0.0.40
codegen_flags: <defaults>
</compile_context>

<pallas_src>
import math

import jax
import jax.numpy as jnp
from jax.experimental import pallas as pl
from jax.experimental.pallas import tpu as pltpu

# --- module hyper-parameters (constructor args / defaults) -------------------------
D_MODEL = 32
MAX_LEN = 32


# ----------------------------- Pallas kernel ---------------------------------------
def _add_kernel(x_ref, pe_ref, o_ref):
    # Both operands identically shaped and lane-dense; dropout == identity at inference.
    o_ref[...] = x_ref[...] + pe_ref[...]


# ------------------------------ wrapper --------------------------------------------
def positional_encoding_forward(x, pe):
    """x: (S, B, d_model); pe: (max_len, 1, d_model) registered buffer.

    Returns x + pe[:S] (eval-mode dropout is identity).
    """
    S, B, D = x.shape
    assert S <= pe.shape[0] and D == pe.shape[2]

    # Pre-broadcast PE at trace time (tiny constant buffer) so both operands are the
    # same shape; this is what enables the lane-dense flatten below.
    pe_full = jnp.broadcast_to(pe[:S].astype(x.dtype), (S, B, D))

    total = S * B * D
    if total % 128 == 0:
        # Lane-dense 2-D layout: last dim a multiple of 128 -> unmasked full-vreg stores.
        lanes = 512 if total % 512 == 0 else 128
        x_flat = x.reshape(total // lanes, lanes)
        pe_flat = pe_full.reshape(total // lanes, lanes)
        out = pl.pallas_call(
            _add_kernel,
            out_shape=jax.ShapeDtypeStruct(x_flat.shape, x.dtype),
            in_specs=[
                pl.BlockSpec(memory_space=pltpu.MemorySpace.VMEM),
                pl.BlockSpec(memory_space=pltpu.MemorySpace.VMEM),
            ],
            out_specs=pl.BlockSpec(memory_space=pltpu.MemorySpace.VMEM),
        )(x_flat, pe_flat)
        return out.reshape(S, B, D)

    # Fallback for sizes not divisible by 128: whole-array VMEM specs, same add,
    # still no grid / no pipeline overhead.
    return pl.pallas_call(
        _add_kernel,
        out_shape=jax.ShapeDtypeStruct((S, B, D), x.dtype),
        in_specs=[
            pl.BlockSpec(memory_space=pltpu.MemorySpace.VMEM),
            pl.BlockSpec(memory_space=pltpu.MemorySpace.VMEM),
        ],
        out_specs=pl.BlockSpec(memory_space=pltpu.MemorySpace.VMEM),
    )(x, pe_full)


# ------------------- deterministic PE buffer (matches PyTorch init) ------------------
def make_pe_buffer(d_model=D_MODEL, max_len=MAX_LEN):
    pos = jnp.arange(max_len, dtype=jnp.float32)[:, None]                    # (L, 1)
    div = jnp.exp(jnp.arange(0, d_model, 2, dtype=jnp.float32)
                  * (-math.log(10000.0) / d_model))                          # (D/2,)
    pe = jnp.zeros((max_len, d_model), jnp.float32)
    pe = pe.at[:, 0::2].set(jnp.sin(pos * div))
    pe = pe.at[:, 1::2].set(jnp.cos(pos * div))
    return pe[:, None, :]          # unsqueeze(0).transpose(0,1) -> (max_len, 1, d_model)


# ------------------------------- pure-JAX reference ---------------------------------
def reference_forward(x, pe):
    return x + pe[: x.shape[0]]    # dropout == identity in eval mode


# ----------------------------------- main --------------------------------------------
if __name__ == "__main__":
    key = jax.random.PRNGKey(0)

    S, B = 8, 2                                   # small shapes implied by the module
    x = jax.random.normal(key, (S, B, D_MODEL), dtype=jnp.float32)
    pe = make_pe_buffer()

    out = positional_encoding_forward(x, pe)
    out = jax.block_until_ready(out)

    assert out.shape == (S, B, D_MODEL), out.shape
    ref = reference_forward(x, pe)
    err = float(jnp.max(jnp.abs(out - ref)))
    if not (err < 1e-5):
        raise AssertionError(f"kernel/reference mismatch, max abs err = {err}")
    print("KERNEL_OK")
</pallas_src>

<mosaic_0001>
module attributes {stable_mosaic.version = 11 : i64} {
  func.func @_add_kernel(%arg0: memref<1x512xf32, #tpu.memory_space<vmem>>, %arg1: memref<1x512xf32, #tpu.memory_space<vmem>>, %arg2: memref<1x512xf32, #tpu.memory_space<vmem>>) attributes {dimension_semantics = [], scalar_prefetch = 0 : i64, scratch_operands = 0 : i64, tpu.core_type = #tpu.core_type<tc>} {
    %c0 = arith.constant 0 : index
    %c0_0 = arith.constant 0 : index
    %0 = vector.load %arg0[%c0, %c0_0] : memref<1x512xf32, #tpu.memory_space<vmem>>, vector<1x512xf32>
    %c0_1 = arith.constant 0 : index
    %c0_2 = arith.constant 0 : index
    %1 = vector.load %arg1[%c0_1, %c0_2] : memref<1x512xf32, #tpu.memory_space<vmem>>, vector<1x512xf32>
    %2 = arith.addf %0, %1 : vector<1x512xf32>
    %c0_3 = arith.constant 0 : index
    %c0_4 = arith.constant 0 : index
    %3 = vector.load %arg2[%c0_3, %c0_4] : memref<1x512xf32, #tpu.memory_space<vmem>>, vector<1x512xf32>
    tpu.vector_store %arg2[%c0_3, %c0_4], %2 {strides = array<i32>} : memref<1x512xf32, #tpu.memory_space<vmem>>, vector<1x512xf32>,
    return
  }
}

</mosaic_0001>

<bundles_post_ra>
// kernel: tpu_custom_call.1
= control target key start
LH: loop header
LB: loop body
LE: loop exit
PB: predicated region body
PF: predicated region fallthrough
CT: control target
= control target key end

     0   :  { %7 = vsyncpa [#allocation3], 0  ;;  %s189_s0 = inlined_call_operand.hbm [shape: f32[1,512], index: 0, kind: input, shape index: {}]   ;;  %s190_s1 = inlined_call_operand.hbm [shape: f32[1,512], index: 1, kind: input, shape index: {}]   ;;  %s191_s2 = inlined_call_operand.hbm [shape: f32[1,512], index: 2, kind: output, shape index: {}]  }
   0x1   :  { %8 = vsyncpa [#allocation6], 0 }
   0x2   :  { %9 = vsyncpa [#allocation4], 0  ;;  %s135_s9 = smov [#allocation2]   ;;  %s136_s11 = smov [#allocation5]  }
   0x3   :  { %s16_s10 = sshll.u32 %s135_s9, 4  ;;  %s26_s12 = sshll.u32 %s136_s11, 4  ;;  %s17_s10 = int_to_ptr.vmem [resolvable:$true] %s16_s10  ;;  %s27_s12 = int_to_ptr.vmem [resolvable:$true] %s26_s12 }
   0x4   :  { %s63_s15 = scalar_lea.hbm %s189_s0, 64 }
   0x5   :  { %p64_p0 = scmp.ne.s32.totalorder %s189_s0, %s63_s15  ;;  %p67_p1 = scmp.lt.u32.totalorder %s63_s15, %s189_s0 }
   0x7   :  { %p69_p2 = pnand %p67_p1, %p64_p0 }
   0x9   :  { %72 = shalt.err (!%p69_p2)
}
   0xa   :  { %s73_s20 = scalar_lea.vmem %s17_s10, 64  ;;  %p78_p4 = scmp.lt.s32.totalorder %s17_s10, %s17_s10 }
   0xb   :  { %p74_p3 = scmp.ne.s32.totalorder %s17_s10, %s73_s20  ;;  %p79_p5 = scmp.lt.s32.totalorder %s73_s20, %s73_s20 }
   0xd   :  { %p80_p6 = por %p79_p5, %p78_p4 }
   0xf   :  { %p81_p7 = pnand %p80_p6, %p74_p3 }
  0x11   :  { %84 = shalt.err (!%p81_p7)
}
  0x12   :  { %19 = dma.hbm_to_vmem [thread:$0]  %s189_s0, 64, %s17_s10, [#allocation3]  }
  0x13   :  { %s85_s25 = scalar_lea.hbm %s190_s1, 64 }
  0x14   :  { %p86_p8 = scmp.ne.s32.totalorder %s190_s1, %s85_s25  ;;  %p89_p9 = scmp.lt.u32.totalorder %s85_s25, %s190_s1 }
  0x16   :  { %p91_p10 = pnand %p89_p9, %p86_p8 }
  0x18   :  { %94 = shalt.err (!%p91_p10)
}
  0x19   :  { %s95_s30 = scalar_lea.vmem %s27_s12, 64  ;;  %p100_p12 = scmp.lt.s32.totalorder %s27_s12, %s27_s12 }
  0x1a   :  { %p96_p11 = scmp.ne.s32.totalorder %s27_s12, %s95_s30  ;;  %p101_p13 = scmp.lt.s32.totalorder %s95_s30, %s95_s30 }
  0x1c   :  { %p102_p0 = por %p101_p13, %p100_p12 }
  0x1e   :  { %p103_p1 = pnand %p102_p0, %p96_p11 }
  0x20   :  { %106 = shalt.err (!%p103_p1)
}
  0x21   :  { %29 = dma.hbm_to_vmem [thread:$0]  %s190_s1, 64, %s27_s12, [#allocation6]  }
  0x22   :  { %129 = dma.done.wait [#allocation3], 64  }
  0x23   :  { %130 = vsyncadd [#allocation3], 4294967232 }
  0x24   :  { %131 = dma.done.wait [#allocation6], 64  }
  0x25   :  { %132 = vsyncadd [#allocation6], 4294967232  ;;  %v39_v0 = vlaneseq  ;;  %s137_s4 = smov [#allocation7]   ;;  %v36_v1 = vld [vmem:[#allocation2] sm:$0xf] }
  0x26   :  { %s50_s5 = sshll.u32 %s137_s4, 4  ;;  %v37_v2 = vld [vmem:[#allocation5] sm:$0xf]  ;;  %s51_s5 = int_to_ptr.vmem [resolvable:$true] %s50_s5 }
  0x27   :  { %vm41_vm0 = vcmp.lt.s32.totalorder %v39_v0, 512  ;;  %v38_v3 = vadd.f32 %v37_v2, %v36_v1  ;;  %s107_s6 = scalar_lea.vmem %s51_s5, 64  ;;  %p112_p3 = scmp.lt.s32.totalorder %s51_s5, %s51_s5 }
  0x28   :  { %p108_p2 = scmp.ne.s32.totalorder %s51_s5, %s107_s6  ;;  %p113_p4 = scmp.lt.s32.totalorder %s107_s6, %s107_s6 }
  0x29   :  { %43 = vst.msk [vmem:[#allocation7] sm:$0xf] %vm41_vm0, %v38_v3 }
  0x2a   :  { %p114_p5 = por %p113_p4, %p112_p3 }
  0x2c   :  { %p115_p6 = pnand %p114_p5, %p108_p2 }
  0x2e   :  { %118 = shalt.err (!%p115_p6)
}
  0x2f   :  { %s119_s8 = scalar_lea.hbm %s191_s2, 64 }
  0x30   :  { %p120_p7 = scmp.ne.s32.totalorder %s191_s2, %s119_s8  ;;  %p123_p8 = scmp.lt.u32.totalorder %s119_s8, %s191_s2 }
  0x32   :  { %p125_p9 = pnand %p123_p8, %p120_p7 }
  0x34   :  { %128 = shalt.err (!%p125_p9)
}
  0x35   :  { %53 = dma.vmem_to_hbm [thread:$0]  %s51_s5, 64, %s191_s2, [#allocation4]  }
  0x36   :  { %133 = dma.done.wait [#allocation4], 64  }
  0x37   :  { %134 = vsyncadd [#allocation4], 4294967232 }
  0x38   :  { %57 = vsyncpa [#allocation3], 1 }
  0x39   :  { %58 = vsyncpa [#allocation6], 1 }
  0x3a   :  { %59 = vsyncpa [#allocation4], 1 }

</bundles_post_ra>
